<compile_context>
chip_gen: v6e
topology: v6e:2x2x1
jax: 0.10.0
libtpu: 0.0.40
codegen_flags: <defaults>
</compile_context>

<pallas_src>
import jax
import jax.numpy as jnp
from jax.experimental import pallas as pl
from jax.experimental.pallas import tpu as pltpu

_LANE = 128
_INV_SQRT2 = 0.7071067811865476  # 1/sqrt(2)

# Abramowitz & Stegun 7.1.26 erfc coefficients (|erf error| <= 1.5e-7).
_P = 0.3275911
_A1 = 0.254829592
_A2 = -0.284496736
_A3 = 1.421413741
_A4 = -1.453152027
_A5 = 1.061405429


def _gelu_kernel_fast(x_ref, o_ref):
    """Erf-GELU via erfc(|u|) ~= poly(t) * exp(-u^2)  (exp runs on the EUP)."""
    x = x_ref[...].astype(jnp.float32)
    u = x * _INV_SQRT2
    a = jnp.abs(u)
    t = 1.0 / (1.0 + _P * a)
    poly = ((((_A5 * t + _A4) * t + _A3) * t + _A2) * t + _A1) * t
    g = poly * jnp.exp(-(a * a))          # ~= erfc(|u|) = 1 - erf(|u|)
    half_xg = 0.5 * x * g
    # x >= 0: 0.5*x*(2 - g) = x - 0.5*x*g ;  x < 0: 0.5*x*g
    y = jnp.where(x >= 0.0, x - half_xg, half_xg)
    o_ref[...] = y.astype(o_ref.dtype)


def _gelu_kernel_exact(x_ref, o_ref):
    """Bit-parity path: exact erf (VALU polynomial, slower on v6e/v7x)."""
    x = x_ref[...].astype(jnp.float32)
    y = 0.5 * x * (1.0 + jax.lax.erf(x * _INV_SQRT2))
    o_ref[...] = y.astype(o_ref.dtype)


def gelu_pallas(x, *, exact=False, block_bytes=4 * 1024 * 1024):
    """Elementwise GELU (torch.nn.GELU() default semantics) for any shape."""
    orig_shape = x.shape
    dtype = x.dtype
    n = x.size
    if n == 0:
        return x

    itemsize = jnp.dtype(dtype).itemsize
    sub = max(8, 32 // itemsize)                 # 8 f32, 16 bf16, 32 int8/fp8

    # Flatten to a lane-dense (rows, 128) view.  Metadata-only whenever
    # n % 128 == 0; only truly odd sizes pay a pad + tail-slice.
    x_flat = x.reshape(-1)
    pad = (-n) % _LANE
    if pad:
        x_flat = jnp.pad(x_flat, (0, pad))       # GELU(0)=0; tail sliced below
    rows = (n + pad) // _LANE
    x2d = x_flat.reshape(rows, _LANE)

    # Tile rows: ~block_bytes per block, multiple of the dtype sublane tile,
    # and at least 2 grid steps when possible (feeds both v7x TensorCores).
    tile_rows = max(sub, block_bytes // (_LANE * itemsize))
    tile_rows = (tile_rows // sub) * sub
    if rows <= sub:
        tr = rows                                # full-extent block (legal)
    else:
        half = pl.cdiv(pl.cdiv(rows, 2), sub) * sub
        tr = min(tile_rows, half)
    grid = (pl.cdiv(rows, tr),)                  # ragged last block masked

    kernel = _gelu_kernel_exact if exact else _gelu_kernel_fast
    cost = pl.CostEstimate(
        flops=(30 if exact else 15) * n,
        transcendentals=0 if exact else n,
        bytes_accessed=2 * n * itemsize,
    )

    out2d = pl.pallas_call(
        kernel,
        out_shape=jax.ShapeDtypeStruct((rows, _LANE), dtype),
        grid_spec=pl.GridSpec(
            grid=grid,
            in_specs=[pl.BlockSpec((tr, _LANE), lambda i: (i, 0))],
            out_specs=pl.BlockSpec((tr, _LANE), lambda i: (i, 0)),
        ),
        compiler_params=pltpu.CompilerParams(
            dimension_semantics=("parallel",),
            vmem_limit_bytes=32 * 1024 * 1024,
        ),
        cost_estimate=cost,
    )(x2d)

    out_flat = out2d.reshape(-1)
    if pad:
        out_flat = out_flat[:n]
    return out_flat.reshape(orig_shape)


if __name__ == "__main__":
    key = jax.random.PRNGKey(0)

    # Primary check: NCHW f32 input, same convention as the PyTorch module.
    x = jax.random.normal(key, (2, 4, 16, 16), dtype=jnp.float32)
    y = gelu_pallas(x)
    jax.block_until_ready(y)
    y_ref = jax.nn.gelu(x, approximate=False)
    assert y.shape == x.shape and y.dtype == x.dtype
    assert jnp.max(jnp.abs(y - y_ref)) < 1e-5, "f32 mismatch"

    # bf16 input (exercises 16-row sublane tiling).
    xb = jax.random.normal(key, (2, 4, 16, 16), dtype=jnp.bfloat16)
    yb = gelu_pallas(xb)
    jax.block_until_ready(yb)
    yb_ref = jax.nn.gelu(xb.astype(jnp.float32), approximate=False)
    assert yb.dtype == jnp.bfloat16
    assert jnp.max(jnp.abs(yb.astype(jnp.float32) - yb_ref)) < 3e-2, "bf16 mismatch"

    # Ragged size (n % 128 != 0) exercises the pad + tail-slice fallback.
    xr = jax.random.normal(key, (3, 5, 7), dtype=jnp.float32)
    yr = gelu_pallas(xr)
    jax.block_until_ready(yr)
    assert yr.shape == xr.shape
    assert jnp.max(jnp.abs(yr - jax.nn.gelu(xr, approximate=False))) < 1e-5, "ragged mismatch"

    print("KERNEL_OK")
</pallas_src>

<mosaic_0001>
module attributes {stable_mosaic.version = 11 : i64} {
  func.func @_gelu_kernel_fast(%arg0: i32, %arg1: memref<8x128xf32, #tpu.memory_space<vmem>>, %arg2: memref<8x128xf32, #tpu.memory_space<vmem>>) attributes {dimension_semantics = [#tpu.dimension_semantics<parallel>], iteration_bounds = array<i64: 2>, scalar_prefetch = 0 : i64, scratch_operands = 0 : i64, tpu.core_type = #tpu.core_type<tc>, window_params = [{transform_indices = @transform_0, window_bounds = array<i64: 8, 128>}, {transform_indices = @transform_1, window_bounds = array<i64: 8, 128>}]} {
    %c0 = arith.constant 0 : index
    %c0_0 = arith.constant 0 : index
    %0 = vector.load %arg1[%c0, %c0_0] : memref<8x128xf32, #tpu.memory_space<vmem>>, vector<8x128xf32>
    %cst = arith.constant 0.707106769 : f32
    %1 = vector.broadcast %cst : f32 to vector<8x128xf32>
    %2 = arith.mulf %0, %1 : vector<8x128xf32>
    %3 = math.absf %2 : vector<8x128xf32>
    %cst_1 = arith.constant 0.327591091 : f32
    %4 = vector.broadcast %cst_1 : f32 to vector<8x128xf32>
    %5 = arith.mulf %4, %3 : vector<8x128xf32>
    %cst_2 = arith.constant 1.000000e+00 : f32
    %6 = vector.broadcast %cst_2 : f32 to vector<8x128xf32>
    %7 = arith.addf %6, %5 : vector<8x128xf32>
    %cst_3 = arith.constant 1.000000e+00 : f32
    %8 = vector.broadcast %cst_3 : f32 to vector<8x128xf32>
    %9 = arith.divf %8, %7 : vector<8x128xf32>
    %cst_4 = arith.constant 1.06140542 : f32
    %10 = vector.broadcast %cst_4 : f32 to vector<8x128xf32>
    %11 = arith.mulf %10, %9 : vector<8x128xf32>
    %cst_5 = arith.constant -1.45315206 : f32
    %12 = vector.broadcast %cst_5 : f32 to vector<8x128xf32>
    %13 = arith.addf %11, %12 : vector<8x128xf32>
    %14 = arith.mulf %13, %9 : vector<8x128xf32>
    %cst_6 = arith.constant 1.42141378 : f32
    %15 = vector.broadcast %cst_6 : f32 to vector<8x128xf32>
    %16 = arith.addf %14, %15 : vector<8x128xf32>
    %17 = arith.mulf %16, %9 : vector<8x128xf32>
    %cst_7 = arith.constant -0.284496725 : f32
    %18 = vector.broadcast %cst_7 : f32 to vector<8x128xf32>
    %19 = arith.addf %17, %18 : vector<8x128xf32>
    %20 = arith.mulf %19, %9 : vector<8x128xf32>
    %cst_8 = arith.constant 0.254829586 : f32
    %21 = vector.broadcast %cst_8 : f32 to vector<8x128xf32>
    %22 = arith.addf %20, %21 : vector<8x128xf32>
    %23 = arith.mulf %22, %9 : vector<8x128xf32>
    %24 = arith.mulf %3, %3 : vector<8x128xf32>
    %cst_9 = arith.constant 0.000000e+00 : f32
    %25 = vector.broadcast %cst_9 : f32 to vector<8x128xf32>
    %26 = arith.subf %25, %24 : vector<8x128xf32>
    %27 = math.exp %26 : vector<8x128xf32>
    %28 = arith.mulf %23, %27 : vector<8x128xf32>
    %cst_10 = arith.constant 5.000000e-01 : f32
    %29 = vector.broadcast %cst_10 : f32 to vector<8x128xf32>
    %30 = arith.mulf %29, %0 : vector<8x128xf32>
    %31 = arith.mulf %30, %28 : vector<8x128xf32>
    %cst_11 = arith.constant 0.000000e+00 : f32
    %32 = vector.broadcast %cst_11 : f32 to vector<8x128xf32>
    %33 = arith.cmpf oge, %0, %32 : vector<8x128xf32>
    %34 = arith.subf %0, %31 : vector<8x128xf32>
    %35 = arith.select %33, %34, %31 : vector<8x128xi1>, vector<8x128xf32>
    %c0_12 = arith.constant 0 : index
    %c0_13 = arith.constant 0 : index
    %36 = vector.load %arg2[%c0_12, %c0_13] : memref<8x128xf32, #tpu.memory_space<vmem>>, vector<8x128xf32>
    tpu.vector_store %arg2[%c0_12, %c0_13], %35 {strides = array<i32>} : memref<8x128xf32, #tpu.memory_space<vmem>>, vector<8x128xf32>,
    return
  }
  func.func @transform_0(%arg0: i32) -> (i32, i32) {
    %c0_i32 = arith.constant 0 : i32
    %c0_i32_0 = arith.constant 0 : i32
    return %arg0, %c0_i32 : i32, i32
  }
  func.func @transform_1(%arg0: i32) -> (i32, i32) {
    %c0_i32 = arith.constant 0 : i32
    %c0_i32_0 = arith.constant 0 : i32
    return %arg0, %c0_i32 : i32, i32
  }
}

</mosaic_0001>

<bundles_post_ra>
// kernel: tpu_custom_call.1
= control target key start
LH: loop header
LB: loop body
LE: loop exit
PB: predicated region body
PF: predicated region fallthrough
CT: control target
= control target key end

     0   :  { %6 = vsyncpa [#allocation3], 0  ;;  %s558_s0 = inlined_call_operand.hbm [shape: f32[16,128], index: 0, kind: input, shape index: {}]   ;;  %s559_s1 = inlined_call_operand.hbm [shape: f32[16,128], index: 1, kind: output, shape index: {}]  }
   0x1   :  { %8 = vsyncpa [#allocation3 + $0x1], 0 }
   0x2   :  { %9 = vsyncpa [#allocation4], 0 }
   0x3   :  { %11 = vsyncpa [#allocation4 + $0x1], 0  ;;  %s411_s6 = smov 0   ;;  %s413_s7 = smov 0  }
   0x4   :  { %s415_s8 = smov 0   ;;  %s417_s9 = smov 0  }
   0x5 LB: > { %s432_s10 = sadd.s32 4294967295, %s397_s9   ;;  %s243_s11 = sadd.s32 4294967294, %s397_s9   ;;  %s397_s9 = sphi %s417_s9, %s576_s9   ;;  %s393_s8 = sphi %s415_s8, %s575_s8   ;;  %s389_s7 = sphi %s413_s7, %s574_s7   ;;  %s385_s6 = sphi %s411_s6, %s573_s6  }
   0x6   : > { %s436_s12 = sadd.s32 1, %s397_s9   ;;  %s24_s13 = sadd.s32 1, %s393_s8 }
   0x7   : > { %s21_s14 = ssub.s32 %s397_s9, %s436_s12  ;;  %p31_p0 = scmp.ne.s32.totalorder %s393_s8, %s389_s7 }
   0x8   : > { %p22_p1 = scmp.eq.s32.totalorder %s21_s14, 0  ;;  %p32_p2 = scmp.eq.s32.totalorder %s397_s9, 0 }
   0x9   : > { %p37_p3 = scmp.ne.s32.totalorder %s389_s7, %s385_s6  ;;  %p38_p4 = scmp.eq.s32.totalorder %s432_s10, 0 }
   0xa   : > { %s448_s15 = scalar_select %p22_p1, %s393_s8, %s24_s13  }
   0xb   : > { %p450_p5 = por %p32_p2, %p31_p0  ;;  %p454_p6 = por %p38_p4, %p37_p3 }
   0xc   : > { %p61_p7 = scmp.eq.s32.totalorder %s432_s10, 1  ;;  %p67_p8 = scmp.eq.s32.totalorder %s243_s11, 1 }
   0xd   : > { %s563_s17 = scalar_select %p454_p6, 1, 0 }
   0xe   : > { %p267_p10 = scmp.lt.s32.totalorder %s397_s9, 2  ;;  %p461_p11 = por %p61_p7, %p31_p0 }
   0xf   : > { %p465_p12 = por %p67_p8, %p37_p3  ;;  %s87_s20 = sand.u32 1, %s393_s8  }
  0x10   : > { %s564_s18 = scalar_select %p461_p11, 1, 0 }
  0x11   : > { %s565_s19 = scalar_select %p465_p12, 1, 0 }
  0x12   : > { %s247_s21 = sshll.u32 %s397_s9, 7  ;;  %s246_s22 = sshll.u32 %s87_s20, 3 }
  0x13   : > { %s474_s25 = scalar_lea.hbm %s558_s0, %s247_s21  ;;  %s91_s26 = scalar_lea.vmem [#allocation2], %s246_s22 }
  0x14   : > { %s98_s27 = sshll.u32 %s91_s26, 4  ;;  %p478_p13 = pnand %p267_p10, %p450_p5  ;;  %s482_s27 = int_to_ptr.vmem [resolvable:$true] %s98_s27 }
  0x15   : > { %s88_s29 = scalar_lea.sflag [#allocation3], %s87_s20  ;;  %s305_s30 = scalar_lea.hbm %s474_s25, 128 }
  0x16   : > { %p306_p2 = scmp.ne.s32.totalorder %s474_s25, %s305_s30  ;;  %p307_p3 = pneg %p478_p13 }
  0x17   : > { %s310_s4 = scalar_lea.hbm %s558_s0, 256  ;;  %p311_p5 = scmp.lt.s32.totalorder %s474_s25, %s558_s0 }
  0x18   : > { %p308_p4 = pnand %p307_p3, %p306_p2  ;;  %p312_p8 = scmp.lt.s32.totalorder %s310_s4, %s305_s30 }
  0x1a   : > { %p309_p7 = pneg %p308_p4  ;;  %p313_p10 = por %p312_p8, %p311_p5 }
  0x1c   : > { %p314_p9 = pnand %p313_p10, %p309_p7 }
  0x1e   : > { %317 = shalt.err (!%p314_p9)
}
  0x1f   : > { %s318_s13 = scalar_lea.vmem %s482_s27, 128  ;;  %s399_s14 = smov [#allocation2]  }
  0x20   : > { %p319_p0 = scmp.ne.s32.totalorder %s482_s27, %s318_s13  ;;  %s323_s16 = sshll.u32 %s399_s14, 4  ;;  %s324_s16 = int_to_ptr.vmem [resolvable:$false] %s323_s16 }
  0x21   : > { %s325_s20 = scalar_lea.vmem %s324_s16, 256  ;;  %p326_p4 = scmp.lt.s32.totalorder %s482_s27, %s324_s16 }
  0x22   : > { %p321_p1 = pnand %p319_p0, %p307_p3  ;;  %p327_p12 = scmp.lt.s32.totalorder %s325_s20, %s318_s13 }
  0x24   : > { %p322_p2 = pneg %p321_p1  ;;  %p328_p11 = por %p327_p12, %p326_p4 }
  0x26   : > { %p329_p6 = pnand %p328_p11, %p322_p2 }
  0x28   : > { %332 = shalt.err (!%p329_p6)
}
  0x29   : > { %262 = dma.hbm_to_vmem [thread:$0]  (!%p478_p13), %s474_s25, 128, %s482_s27, %s88_s29  }
  0x2a   : > { %p567_p9 = scmp.lt.s32.totalorder %s397_s9, 3  ;;  %p568_p7 = scmp.ge.s32.totalorder %s397_s9, 1 }
  0x2c   : > { %p104_p0 = pnand %p568_p7, %p567_p9 }
  0x2d   : > { %s509_s21 = sand.u32 (!%p104_p0), 1, %s389_s7   ;;  %p569_p6 = scmp.ne.s32.totalorder (!%p104_p0), %s563_s17, 0 }
  0x2e   : > { %107 = sbr.rel (%p104_p0) target bundleno = 113 (0x71), region = 24  ;;  %s249_s22 = sshll.u32 (!%p104_p0), %s509_s21, 3 }
  0x2f   : > { %s110_s23 = scalar_lea.sflag (!%p104_p0), [#allocation3], %s509_s21  ;;  %s113_s24 = scalar_lea.vmem (!%p104_p0), [#allocation2], %s249_s22 }
  0x33   : > { %376 = dma.done.wait (%p569_p6), %s110_s23, 128  }
  0x34   : > { %378 = vsyncadd (%p569_p6), %s110_s23, 4294967168  ;;  %v132_v0 = vld [vmem:[%s113_s24] sm:$0xff]  ;;  %s131_s17 = scalar_lea.vmem [#allocation5], %s249_s22  ;;  %s252_s26 = sshll.u32 %s432_s10, 7 }
  0x35   : > { %v133_v1 = vmul.f32 0.70710677, %v132_v0  ;;  %v153_v19 = vmul.f32 0.5, %v132_v0  ;;  %s173_s25 = sshll.u32 %s131_s17, 4  ;;  %vm155_vm0 = vcmp.ge.f32.partialorder %v132_v0, 0.0  ;;  %s171_s29 = scalar_lea.hbm %s559_s1, %s252_s26  ;;  %s518_s25 = int_to_ptr.vmem [resolvable:$true] %s173_s25 }
  0x36   : > { %s160_s30 = scalar_lea.sflag [#allocation4], %s509_s21  ;;  %s333_s2 = scalar_lea.vmem %s518_s25, 128 }
  0x37   : > { %v134_v2 = vand.u32 2147483647, %v133_v1  ;;  %p334_p11 = scmp.ne.s32.totalorder %s518_s25, %s333_s2  ;;  %p570_p12 = scmp.ne.s32.totalorder %s564_s18, 0 }
  0x38   : > { %s400_s10 = smov [#allocation5]  }
  0x39   : > { %v135_v3 = vmul.f32 0.3275911, %v134_v2  ;;  %v148_v5 = vmul.f32 %v134_v2, %v134_v2  ;;  %p335_p13 = pnand %p334_p11, %p570_p12  ;;  %s337_s3 = sshll.u32 %s400_s10, 4  ;;  %s338_s3 = int_to_ptr.vmem [resolvable:$false] %s337_s3 }
  0x3a   : > { %s339_s4 = scalar_lea.vmem %s338_s3, 256  ;;  %p340_p3 = scmp.lt.s32.totalorder %s518_s25, %s338_s3 }
  0x3b   : > { %v136_v4 = vadd.f32 1.0, %v135_v3  ;;  %v149_v6 = vsub.f32 0.0, %v148_v5  ;;  %p336_p1 = pneg %p335_p13  ;;  %p341_p5 = scmp.lt.s32.totalorder %s339_s4, %s333_s2 }
  0x3d   : > { %301 = vrcp.f32 %v136_v4  ;;  %v150_v7 = vmul.f32 1.442695, %v149_v6  ;;  %p342_p8 = por %p341_p5, %p340_p3 }
  0x3f   : > { %303 = vpow2.f32 %v150_v7  ;;  %p343_p10 = pnand %p342_p8, %p336_p1 }
  0x4a   : > { %v302_v8 = vpop.eup %301 }
  0x4b   : > { %v139_v9 = vmul.f32 1.0614054, %v302_v8 }
  0x4c   : > { %v304_v17 = vpop.eup %303 }
  0x4d   : > { %v140_v10 = vadd.f32 -1.4531521, %v139_v9 }
  0x4f   : > { %v141_v11 = vmul.f32 %v302_v8, %v140_v10 }
  0x51   : > { %v142_v12 = vadd.f32 1.4214138, %v141_v11 }
  0x53   : > { %v143_v13 = vmul.f32 %v302_v8, %v142_v12 }
  0x55   : > { %v144_v14 = vadd.f32 -0.28449672, %v143_v13 }
  0x57   : > { %v145_v15 = vmul.f32 %v302_v8, %v144_v14 }
  0x59   : > { %v146_v16 = vadd.f32 0.2548296, %v145_v15 }
  0x5b   : > { %v147_v18 = vmul.f32 %v302_v8, %v146_v16 }
  0x5d   : > { %v152_v20 = vmul.f32 %v304_v17, %v147_v18 }
  0x5f   : > { %v154_v21 = vmul.f32 %v153_v19, %v152_v20 }
  0x61   : > { %v156_v22 = vsub.f32 %v132_v0, %v154_v21 }
  0x63   : > { %v157_v23 = vsel %vm155_vm0, %v156_v22, %v154_v21 }
  0x64   : > { %158 = vst [vmem:[%s131_s17] sm:$0xff] %v157_v23 }
  0x65   : > { %346 = shalt.err (!%p343_p10)
}
  0x66   : > { %s347_s5 = scalar_lea.hbm %s171_s29, 128  ;;  %s351_s14 = scalar_lea.hbm %s559_s1, 256 }
  0x67   : > { %p348_p2 = scmp.ne.s32.totalorder %s171_s29, %s347_s5  ;;  %p352_p7 = scmp.lt.s32.totalorder %s171_s29, %s559_s1 }
  0x68   : > { %p353_p0 = scmp.lt.s32.totalorder %s351_s14, %s347_s5 }
  0x69   : > { %p349_p4 = pnand %p348_p2, %p570_p12 }
  0x6a   : > { %p354_p6 = por %p353_p0, %p352_p7 }
  0x6b   : > { %p350_p9 = pneg %p349_p4 }
  0x6d   : > { %p355_p11 = pnand %p354_p6, %p350_p9 }
  0x6f   : > { %358 = shalt.err (!%p355_p11)
}
  0x70   : > { %257 = dma.vmem_to_hbm [thread:$0]  (%p570_p12), %s518_s25, 128, %s171_s29, %s160_s30  }
  0x71 PF: > { %s185_s21 = sand.u32 1, %s385_s6   ;;  %p571_p13 = scmp.ne.s32.totalorder %s565_s19, 0 }
  0x72   : > { %p572_p1 = scmp.ge.s32.totalorder %s397_s9, 2  ;;  %s186_s22 = scalar_lea.sflag [#allocation4], %s185_s21 }
  0x74   : > { %p264_p3 = pnand %p572_p1, %p571_p13 }
  0x76   : > { %p265_p5 = pneg %p264_p3 }
  0x78   : > { %380 = dma.done.wait (%p265_p5), %s186_s22, 128  }
  0x79   : > { %382 = vsyncadd (%p265_p5), %s186_s22, 4294967168  ;;  %p14_p8 = scmp.ge.s32.totalorder %s436_s12, 4   ;;  %s573_s6 = smov %s389_s7 }
  0x7a   : > { %s574_s7 = smov %s393_s8  ;;  %s575_s8 = smov %s448_s15 }
  0x7b   : > { %s576_s9 = smov %s436_s12  ;;  %16 = sbr.rel (!%p14_p8) target bundleno = 5 (0x5), region = 69 }
  0x80   :  { %191 = vsyncpa [#allocation3], 1 }
  0x81   :  { %193 = vsyncpa [#allocation3 + $0x1], 1 }
  0x82   :  { %194 = vsyncpa [#allocation4], 1 }
  0x83   :  { %196 = vsyncpa [#allocation4 + $0x1], 1 }

</bundles_post_ra>
